<compile_context>
chip_gen: v7x
topology: tpu7x:2x2x1
jax: 0.10.0
libtpu: 0.0.40
codegen_flags: <defaults>
</compile_context>

<pallas_src>
import functools

import jax
import jax.numpy as jnp
from jax.experimental import pallas as pl
from jax.experimental.pallas import tpu as pltpu


def _qloss_kernel(logit_ref, target_ref, out_ref, *, q, k, n_valid, tile_n):
    blk = pl.program_id(0)

    logit = logit_ref[...].astype(jnp.float32)        # (tile_n, c_pad)
    tgt = target_ref[...]                             # (tile_n, 1) int32
    tn, c_pad = logit.shape

    # Row-wise numerically-stable softmax numerator / denominator.
    m = jnp.max(logit, axis=-1, keepdims=True)
    e = jnp.exp(logit - m)                            # (tile_n, c_pad)
    denom = jnp.sum(e, axis=-1, keepdims=True)        # (tile_n, 1)

    # Gather e[i, target[i]] via iota-compare; no full prob matrix, no N*C divides.
    cls = jax.lax.broadcasted_iota(jnp.int32, (tn, c_pad), 1)
    e_target = jnp.sum(jnp.where(cls == tgt, e, 0.0), axis=-1, keepdims=True)
    target_prob = e_target / denom                    # (tile_n, 1) — only tn divides

    loss_of_k = (1.0 - k ** q) / q
    qloss = (1.0 - jnp.power(target_prob, q)) / q
    per_example = jnp.where(target_prob >= k, qloss, loss_of_k)   # (tile_n, 1)

    # Mask padded rows (global row index >= true N).
    row = jax.lax.broadcasted_iota(jnp.int32, (tn, 1), 0) + blk * tile_n
    per_example = jnp.where(row < n_valid, per_example, 0.0)

    block_sum = jnp.sum(per_example)                  # scalar partial for this block

    # Lane/sublane-dense (8, 128) output tile: partial at [0, 0], zeros elsewhere.
    r = jax.lax.broadcasted_iota(jnp.int32, (8, 128), 0)
    c = jax.lax.broadcasted_iota(jnp.int32, (8, 128), 1)
    out_ref[...] = jnp.where((r == 0) & (c == 0), block_sum, 0.0)


def qloss_pallas(logit, target, q=0.8, k=0.1, vmem_input_budget=8 * 1024 * 1024):
    """logit: (N, C) float; target: (N,) int. Returns scalar f32 loss."""
    n, c = logit.shape

    # Lane-dense class dim.
    c_pad = ((c + 127) // 128) * 128

    # Tile rows so the double-buffered logit block fits the VMEM budget;
    # keep it a multiple of 8 and don't over-pad small batches.
    bytes_per_row = c_pad * jnp.dtype(logit.dtype).itemsize
    tile_n = (vmem_input_budget // (2 * bytes_per_row)) // 8 * 8
    tile_n = int(max(8, min(512, tile_n)))
    tile_n = min(tile_n, ((n + 7) // 8) * 8)

    n_pad = ((n + tile_n - 1) // tile_n) * tile_n
    num_blocks = n_pad // tile_n

    # Pad: extra columns/rows get the most-negative finite value so they
    # vanish under exp (no -inf -> no NaN on fully-padded rows, which are
    # masked out anyway).
    pad_val = jnp.finfo(logit.dtype).min
    logit_p = jnp.pad(logit, ((0, n_pad - n), (0, c_pad - c)),
                      constant_values=pad_val)
    target_p = jnp.pad(target.astype(jnp.int32), (0, n_pad - n)).reshape(n_pad, 1)

    partials = pl.pallas_call(
        functools.partial(_qloss_kernel, q=q, k=k, n_valid=n, tile_n=tile_n),
        out_shape=jax.ShapeDtypeStruct((num_blocks * 8, 128), jnp.float32),
        grid=(num_blocks,),
        in_specs=[
            pl.BlockSpec((tile_n, c_pad), lambda i: (i, 0)),
            pl.BlockSpec((tile_n, 1), lambda i: (i, 0)),
        ],
        out_specs=pl.BlockSpec((8, 128), lambda i: (i, 0)),
        compiler_params=pltpu.CompilerParams(
            dimension_semantics=("parallel",),
            vmem_limit_bytes=32 * 1024 * 1024,
        ),
    )(logit_p, target_p)

    # Tiny final reduction outside the kernel; divide by the *global* N.
    return jnp.sum(partials) / n


def qloss_ref(logit, target, q=0.8, k=0.1):
    prob = jax.nn.softmax(logit.astype(jnp.float32), axis=1)
    tp = prob[jnp.arange(logit.shape[0]), target]
    loss_of_k = (1.0 - k ** q) / q
    per = jnp.where(tp >= k, (1.0 - jnp.power(tp, q)) / q, loss_of_k)
    return jnp.sum(per) / logit.shape[0]


if __name__ == "__main__":
    key = jax.random.PRNGKey(0)
    k_logit, k_tgt = jax.random.split(key)

    N, C = 8, 32
    logit = jax.random.normal(k_logit, (N, C), dtype=jnp.float32) * 2.0
    target = jax.random.randint(k_tgt, (N,), 0, C, dtype=jnp.int32)

    out = qloss_pallas(logit, target)
    out = jax.block_until_ready(out)

    ref = qloss_ref(logit, target)
    assert jnp.allclose(out, ref, rtol=1e-5, atol=1e-5), (out, ref)
    print("KERNEL_OK")
</pallas_src>

<mosaic_0001>
module attributes {stable_mosaic.version = 11 : i64} {
  func.func @_qloss_kernel(%arg0: i32, %arg1: memref<8x128xf32, #tpu.memory_space<vmem>>, %arg2: memref<8x1xi32, #tpu.memory_space<vmem>>, %arg3: memref<8x128xf32, #tpu.memory_space<vmem>>) attributes {dimension_semantics = [#tpu.dimension_semantics<parallel>], iteration_bounds = array<i64: 1>, scalar_prefetch = 0 : i64, scratch_operands = 0 : i64, tpu.core_type = #tpu.core_type<tc>, window_params = [{transform_indices = @transform_0, window_bounds = array<i64: 8, 128>}, {transform_indices = @transform_1, window_bounds = array<i64: 8, 1>}, {transform_indices = @transform_2, window_bounds = array<i64: 8, 128>}]} {
    %c0 = arith.constant 0 : index
    %c0_0 = arith.constant 0 : index
    %0 = vector.load %arg1[%c0, %c0_0] : memref<8x128xf32, #tpu.memory_space<vmem>>, vector<8x128xf32>
    %c0_1 = arith.constant 0 : index
    %c0_2 = arith.constant 0 : index
    %1 = vector.load %arg2[%c0_1, %c0_2] : memref<8x1xi32, #tpu.memory_space<vmem>>, vector<8x1xi32>
    %cst = arith.constant dense<0xFF800000> : vector<8xf32>
    %2 = vector.multi_reduction <maximumf>, %0, %cst [1] : vector<8x128xf32> to vector<8xf32>
    %3 = vector.shape_cast %2 : vector<8xf32> to vector<8x1xf32>
    %4 = vector.broadcast %3 : vector<8x1xf32> to vector<8x128xf32>
    %5 = arith.subf %0, %4 : vector<8x128xf32>
    %6 = math.exp %5 : vector<8x128xf32>
    %cst_3 = arith.constant dense<0.000000e+00> : vector<8xf32>
    %7 = vector.multi_reduction <add>, %6, %cst_3 [1] : vector<8x128xf32> to vector<8xf32>
    %8 = vector.shape_cast %7 : vector<8xf32> to vector<8x1xf32>
    %9 = tpu.iota {dimensions = array<i32: 1>} : vector<8x128xi32>
    %10 = vector.broadcast %1 : vector<8x1xi32> to vector<8x128xi32>
    %11 = arith.cmpi eq, %9, %10 : vector<8x128xi32>
    %cst_4 = arith.constant 0.000000e+00 : f32
    %12 = vector.broadcast %cst_4 : f32 to vector<8x128xf32>
    %13 = arith.select %11, %6, %12 : vector<8x128xi1>, vector<8x128xf32>
    %cst_5 = arith.constant dense<0.000000e+00> : vector<8xf32>
    %14 = vector.multi_reduction <add>, %13, %cst_5 [1] : vector<8x128xf32> to vector<8xf32>
    %15 = vector.shape_cast %14 : vector<8xf32> to vector<8x1xf32>
    %16 = arith.divf %15, %8 : vector<8x1xf32>
    %cst_6 = arith.constant 8.000000e-01 : f32
    %17 = vector.broadcast %cst_6 : f32 to vector<8x1xf32>
    %18 = math.powf %16, %17 : vector<8x1xf32>
    %cst_7 = arith.constant 1.000000e+00 : f32
    %19 = vector.broadcast %cst_7 : f32 to vector<8x1xf32>
    %20 = arith.subf %19, %18 : vector<8x1xf32>
    %cst_8 = arith.constant 8.000000e-01 : f32
    %21 = vector.broadcast %cst_8 : f32 to vector<8x1xf32>
    %22 = arith.divf %20, %21 : vector<8x1xf32>
    %cst_9 = arith.constant 1.000000e-01 : f32
    %23 = vector.broadcast %cst_9 : f32 to vector<8x1xf32>
    %24 = arith.cmpf oge, %16, %23 : vector<8x1xf32>
    %cst_10 = arith.constant 1.05188835 : f32
    %25 = vector.broadcast %cst_10 : f32 to vector<8x1xf32>
    %26 = arith.select %24, %22, %25 : vector<8x1xi1>, vector<8x1xf32>
    %27 = tpu.iota {dimensions = array<i32: 0>} : vector<8x1xi32>
    %c8_i32 = arith.constant 8 : i32
    %28 = arith.muli %arg0, %c8_i32 : i32
    %29 = vector.broadcast %28 : i32 to vector<8x1xi32>
    %30 = arith.addi %27, %29 : vector<8x1xi32>
    %c8_i32_11 = arith.constant 8 : i32
    %31 = vector.broadcast %c8_i32_11 : i32 to vector<8x1xi32>
    %32 = arith.cmpi slt, %30, %31 : vector<8x1xi32>
    %cst_12 = arith.constant 0.000000e+00 : f32
    %33 = vector.broadcast %cst_12 : f32 to vector<8x1xf32>
    %34 = arith.select %32, %26, %33 : vector<8x1xi1>, vector<8x1xf32>
    %35 = vector.shape_cast %34 : vector<8x1xf32> to vector<1x8x1xf32>
    %cst_13 = arith.constant dense<0.000000e+00> : vector<1xf32>
    %36 = vector.multi_reduction <add>, %35, %cst_13 [1, 2] : vector<1x8x1xf32> to vector<1xf32>
    %37 = vector.shape_cast %36 : vector<1xf32> to vector<1x1x1xf32>
    %38 = vector.extract %37[0, 0, 0] : f32 from vector<1x1x1xf32>
    %39 = tpu.iota {dimensions = array<i32: 0>} : vector<8x128xi32>
    %40 = tpu.iota {dimensions = array<i32: 1>} : vector<8x128xi32>
    %c0_i32 = arith.constant 0 : i32
    %41 = vector.broadcast %c0_i32 : i32 to vector<8x128xi32>
    %42 = arith.cmpi eq, %39, %41 : vector<8x128xi32>
    %c0_i32_14 = arith.constant 0 : i32
    %43 = vector.broadcast %c0_i32_14 : i32 to vector<8x128xi32>
    %44 = arith.cmpi eq, %40, %43 : vector<8x128xi32>
    %45 = arith.andi %42, %44 : vector<8x128xi1>
    %cst_15 = arith.constant 0.000000e+00 : f32
    %46 = vector.broadcast %38 : f32 to vector<8x128xf32>
    %47 = vector.broadcast %cst_15 : f32 to vector<8x128xf32>
    %48 = arith.select %45, %46, %47 : vector<8x128xi1>, vector<8x128xf32>
    %c0_16 = arith.constant 0 : index
    %c0_17 = arith.constant 0 : index
    %49 = vector.load %arg3[%c0_16, %c0_17] : memref<8x128xf32, #tpu.memory_space<vmem>>, vector<8x128xf32>
    tpu.vector_store %arg3[%c0_16, %c0_17], %48 {strides = array<i32>} : memref<8x128xf32, #tpu.memory_space<vmem>>, vector<8x128xf32>,
    return
  }
  func.func @transform_0(%arg0: i32) -> (i32, i32) {
    %c0_i32 = arith.constant 0 : i32
    %c0_i32_0 = arith.constant 0 : i32
    return %arg0, %c0_i32 : i32, i32
  }
  func.func @transform_1(%arg0: i32) -> (i32, i32) {
    %c0_i32 = arith.constant 0 : i32
    %c0_i32_0 = arith.constant 0 : i32
    return %arg0, %c0_i32 : i32, i32
  }
  func.func @transform_2(%arg0: i32) -> (i32, i32) {
    %c0_i32 = arith.constant 0 : i32
    %c0_i32_0 = arith.constant 0 : i32
    return %arg0, %c0_i32 : i32, i32
  }
}

</mosaic_0001>

<bundles_post_ra>
// kernel: tpu_custom_call.1
= control target key start
LH: loop header
LB: loop body
LE: loop exit
PB: predicated region body
PF: predicated region fallthrough
CT: control target
= control target key end

     0   :  { %s174_s0 = inlined_call_operand.vmem [shape: f32[8,128], index: 0, kind: input, shape index: {}]   ;;  %s175_s1 = inlined_call_operand.vmem [shape: s32[8,1], index: 1, kind: input, shape index: {}]   ;;  %s176_s2 = inlined_call_operand.hbm [shape: f32[8,128], index: 2, kind: output, shape index: {}]  }
   0x1   :  { %v12_v0 = vld [vmem:[%s174_s0] sm:$0xff] }
   0x2   :  { %7 = vsyncpa [#allocation3], 0  ;;  %14 = vmax.xlane.f32.xlu0 %v12_v0  ;;  %v139_v1 = vmov 0   ;;  %v13_v2 = vld [vmem:[%s175_s1] sm:$0xff]  ;;  %v21_v6 = vlaneseq  ;;  %vm45_vm6 = vcmask 7168   ;;  %s140_s0 = smov [#allocation2]  }
   0x3   :  { %106 = vset.pattern.permute.xlu0 %v139_v1  ;;  %s68_s1 = sshll.u32 %s140_s0, 4  ;;  %s69_s1 = int_to_ptr.vmem [resolvable:$true] %s68_s1 }
   0x4   :  { %v22_v7 = vand.u32 127, %v21_v6  ;;  %v39_v35 = vshrl.u32 %v21_v6, 7  ;;  %s115_s14 = scalar_lea.vmem %s69_s1, 128  ;;  %p120_p1 = scmp.lt.s32.totalorder %s69_s1, %s69_s1 }
   0x5   :  { %p116_p0 = scmp.ne.s32.totalorder %s69_s1, %s115_s14  ;;  %p121_p2 = scmp.lt.s32.totalorder %s115_s14, %s115_s14 }
   0x6   :  { %vm56_vm8 = vcmp.eq.s32.totalorder %v39_v35, 0  ;;  %vm57_vm9 = vcmp.eq.s32.totalorder %v22_v7, 0 }
   0x7   :  { %vm58_vm10 = vmand %vm56_vm8, %vm57_vm9  ;;  %p122_p3 = por %p121_p2, %p120_p1 }
   0x9   :  { %p123_p4 = pnand %p122_p3, %p116_p0 }
  0x18   :  { %24 = vperm.xlu0 %106, %v13_v2  }
  0x8f   :  { %v15_v3 = vpop.xlane.xlu0 %14 }
  0x90   :  { %v16_v4 = vsub.f32 %v12_v0, %v15_v3 }
  0x92   :  { %v17_v5 = vmul.f32 1.442695, %v16_v4 }
  0x94   :  { %107 = vpow2.f32 %v17_v5 }
  0x97   :  { %v25_v8 = vpop.permute.xlu0 %24 }
  0x98   :  { %vm26_vm0 = vcmp.eq.s32.totalorder %v22_v7, %v25_v8 }
  0x9e   :  { %v108_v9 = vpop.eup %107 }
  0x9f   :  { %19 = vadd.xlane.f32.xlu1 %v108_v9  ;;  %v27_v10 = vsel %vm26_vm0, %v108_v9, 0.0 }
  0xa3   :  { %28 = vadd.xlane.f32.xlu1 %v27_v10 }
 0x12c   :  { %v20_v11 = vpop.xlane.xlu1 %19 }
 0x12d   :  { %109 = vrcp.f32 %v20_v11 }
 0x130   :  { %v29_v13 = vpop.xlane.xlu1 %28 }
 0x137   :  { %v110_v12 = vpop.eup %109 }
 0x138   :  { %v31_v14 = vmul.f32 %v110_v12, %v29_v13 }
 0x13a   :  { %v80_v15 = vand.u32 2147483647, %v31_v14  ;;  %vm84_vm1 = vcmp.lt.f32.partialorder %v31_v14, 0  ;;  %vm85_vm2 = vcmp.eq.f32.partialorder %v31_v14, 0  ;;  %vm97_vm4 = vcmp.ne.f32.partialorder %v31_v14, %v31_v14 }
 0x13b   :  { %vm86_vm5 = vcmp.eq.f32.partialorder %v31_v14, 1065353216  ;;  %vm36_vm7 = vcmp.ge.f32.partialorder %v31_v14, 0.1 }
 0x13c   :  { %111 = vlog2.f32 %v80_v15  ;;  %vm89_vm3 = vcmp.eq.f32.partialorder %v80_v15, 2139095040 }
 0x146   :  { %v112_v16 = vpop.eup %111 }
 0x147   :  { %v82_v17 = vmul.f32 0.8, %v112_v16 }
 0x149   :  { %113 = vpow2.f32 %v82_v17 }
 0x153   :  { %v114_v18 = vpop.eup %113 }
 0x154   :  { %v90_v19 = vsel %vm84_vm1, 2143289344, %v114_v18 }
 0x155   :  { %v91_v20 = vsel %vm85_vm2, 0, %v90_v19 }
 0x156   :  { %v96_v21 = vsel %vm89_vm3, 2139095040, %v91_v20 }
 0x157   :  { %v100_v22 = vsel %vm97_vm4, 2143289344, %v96_v21 }
 0x158   :  { %v101_v23 = vsel %vm86_vm5, 1065353216, %v100_v22 }
 0x159   :  { %v33_v24 = vsub.f32 1.0, %v101_v23 }
 0x15b   :  { %v35_v25 = vmul.f32 1.25, %v33_v24 }
 0x15d   :  { %v37_v26 = vsel %vm36_vm7, %v35_v25, 1.0518883 }
 0x15e   :  { %v46_v27 = vsel %vm45_vm6, %v37_v26, 0.0 }
 0x15f   :  { %47 = vadd.xlane.f32.xlu1 %v46_v27 }
 0x1ec   :  { %v48_v28 = vpop.xlane.xlu1 %47 }
 0x1ed   :  { %v49_v29 = vrot.slane %v48_v28, 4 }
 0x1ef   :  { %v50_v30 = vadd.f32 %v49_v29, %v48_v28 }
 0x1f1   :  { %v51_v31 = vrot.slane %v50_v30, 2 }
 0x1f3   :  { %v52_v32 = vadd.f32 %v51_v31, %v50_v30 }
 0x1f5   :  { %v53_v33 = vrot.slane %v52_v32, 1 }
 0x1f7   :  { %v54_v34 = vadd.f32 %v53_v33, %v52_v32 }
 0x1f9   :  { %102 = vpush %v54_v34 }
 0x22a   :  { %s103_s13 = spop %102 }
 0x22b   :  { %v59_v36 = vstv %s103_s13 }
 0x22c   :  { %v60_v37 = vsel %vm58_vm10, %v59_v36, 0.0 }
 0x22d   :  { %61 = vst [vmem:[#allocation2] sm:$0xff] %v60_v37 }
 0x22e   :  { %126 = shalt.err (!%p123_p4)
}
 0x22f   :  { %s127_s17 = scalar_lea.hbm %s176_s2, 128 }
 0x230   :  { %p128_p5 = scmp.ne.s32.totalorder %s176_s2, %s127_s17  ;;  %p131_p6 = scmp.lt.u32.totalorder %s127_s17, %s176_s2 }
 0x232   :  { %p133_p7 = pnand %p131_p6, %p128_p5 }
 0x234   :  { %136 = shalt.err (!%p133_p7)
}
 0x235   :  { %71 = dma.vmem_to_hbm [thread:$0]  %s69_s1, 128, %s176_s2, [#allocation3]  }
 0x236   :  { %137 = dma.done.wait [#allocation3], 128  }
 0x237   :  { %138 = vsyncadd [#allocation3], 4294967168 }
 0x238   :  { %75 = vsyncpa [#allocation3], 1 }

</bundles_post_ra>
